<compile_context>
chip_gen: v6e
topology: v6e:2x2x1
jax: 0.10.0
libtpu: 0.0.40
codegen_flags: <defaults>
</compile_context>

<pallas_src>
import functools

import jax
import jax.numpy as jnp
from jax import lax
from jax.experimental import pallas as pl
from jax.experimental.pallas import tpu as pltpu


def _default_exp_dtype():
    """bf16 transcendentals exist on v6e/v7x EUP; v5e and earlier stay f32."""
    try:
        kind = jax.devices()[0].device_kind.lower()
    except Exception:
        return jnp.float32
    if any(tag in kind for tag in ("v6", "v7", "7x")):
        return jnp.bfloat16
    return jnp.float32


def _m2m_kernel(xt_ref, z_ref, vt_ref, *out_refs,
                emit_hidden, exp_dtype, matmul_dtype):
    """Lane-dense body.

    xt_ref: (D, tn) f32   -- x^T tile, N on lanes.
    z_ref : (M, D)  f32   -- inducing points pre-scaled by 1/lengthscale^2.
    vt_ref: (D, M)  matmul_dtype -- V^T pre-scaled by exp(-1/lengthscale^2).
    """
    xt = xt_ref[...]                                          # (D, tn) f32
    zs = z_ref[...]                                           # (M, D)  resident
    vt = vt_ref[...]                                          # (D, M)  resident

    # --- GP mean: RBF kernel against inducing points (lane-dense) ----------
    # exponent = <x, z>/l^2 (f32 MXU, avoids 2-2<x,z> cancellation); the
    # constant exp(-1/l^2) is folded into V in the wrapper, so the big
    # (M, tn) intermediate only sees a single exp per element.
    expnt = jnp.dot(zs, xt, preferred_element_type=jnp.float32)   # (M, tn)
    kmat = jnp.exp(expnt.astype(exp_dtype))                       # EUP exp (bf16 on v6e/v7x)

    coeff_t = jnp.dot(vt, kmat.astype(matmul_dtype),
                      preferred_element_type=jnp.float32)         # (D, tn) MXU

    # --- ProjectToTangent (extrinsic): remove the normal component ---------
    # reductions over D = 8 sublanes -> cheap.
    inner = jnp.sum(coeff_t * xt, axis=0, keepdims=True)          # (1, tn)
    u_t = coeff_t - inner * xt                                    # (D, tn)

    # --- ExponentialMap on the sphere (f32, EUP rsqrt/sin/cos) -------------
    nrm2 = jnp.sum(u_t * u_t, axis=0, keepdims=True)              # (1, tn)
    safe = nrm2 > 1e-24
    inv_nrm = lax.rsqrt(jnp.where(safe, nrm2, 1.0))               # EUP, off the VALU
    nrm = nrm2 * inv_nrm
    sinc = jnp.where(safe, jnp.sin(nrm) * inv_nrm, 1.0)           # sin(t)/t -> 1 at 0
    y_t = jnp.cos(nrm) * xt + sinc * u_t                          # (D, tn)

    out_refs[0][...] = y_t.astype(out_refs[0].dtype)
    if emit_hidden:
        out_refs[1][...] = coeff_t.astype(out_refs[1].dtype)
        out_refs[2][...] = u_t.astype(out_refs[2].dtype)


def _pick_tile_n(n, tile_n):
    """Large lane tiles (amortize ~0.35us/step) but keep the grid splittable
    across v7x's 2 TensorCores (aim for ~8 grid steps, cap at 4096 lanes)."""
    if tile_n is not None:
        assert tile_n % 128 == 0, "tile_n must be a multiple of 128 (lane width)"
        return tile_n
    target_steps = 8
    t = ((pl.cdiv(n, target_steps) + 127) // 128) * 128
    return max(128, min(4096, t))


def manifold_to_manifold_layer(x, inducing_points, variational_weights,
                               lengthscale=1.0, tile_n=None,
                               return_hidden=False,
                               matmul_dtype=jnp.bfloat16,
                               exp_dtype=None,
                               hidden_dtype=None,
                               lane_dense_output=False):
    """Pallas-backed forward pass.

    x: (N, D) points on S^{D-1} (assumed unit-norm, as required by the layer).
    inducing_points: (M, D) unit-norm inducing locations.
    variational_weights: (M, D) synthetic variational-mean weights.
    lane_dense_output: if True, return (D, N) slabs and skip the wrapper
      transpose (saves 1-3 extra HBM passes when the consumer can fuse it).
    """
    N, D = x.shape
    M, Dz = inducing_points.shape
    assert D == Dz and variational_weights.shape == (M, D)

    if exp_dtype is None:
        exp_dtype = _default_exp_dtype()
    if hidden_dtype is None:
        hidden_dtype = x.dtype

    # Fold the RBF affine into the (tiny) resident operands once:
    #   k(x,z) = exp(-(2-2<x,z>)/(2 l^2)) = exp(<x,z>/l^2) * exp(-1/l^2)
    inv_l2 = 1.0 / (float(lengthscale) * float(lengthscale))
    z_scaled = (inducing_points.astype(jnp.float32) * inv_l2)          # (M, D) f32
    vt_scaled = (variational_weights.astype(jnp.float32).T
                 * jnp.float32(jnp.exp(-inv_l2))).astype(matmul_dtype)  # (D, M)

    # Lane-dense layout: put the big N axis on the lane dimension.
    # No jnp.pad copy -- Pallas handles the ragged last block; garbage lanes
    # stay per-column and are never written back.
    xt = x.astype(jnp.float32).T                                        # (D, N)

    tn = _pick_tile_n(N, tile_n)
    grid = (pl.cdiv(N, tn),)

    kernel = functools.partial(_m2m_kernel,
                               emit_hidden=return_hidden,
                               exp_dtype=exp_dtype,
                               matmul_dtype=matmul_dtype)

    out_block = pl.BlockSpec((D, tn), lambda i: (0, i))
    out_shapes = [jax.ShapeDtypeStruct((D, N), x.dtype)]               # manifold y^T
    out_specs = [out_block]
    if return_hidden:
        out_shapes += [jax.ShapeDtypeStruct((D, N), hidden_dtype),     # coefficients^T
                       jax.ShapeDtypeStruct((D, N), hidden_dtype)]     # tangent u^T
        out_specs += [pl.BlockSpec((D, tn), lambda i: (0, i)),
                      pl.BlockSpec((D, tn), lambda i: (0, i))]

    # Transcendental-dominated cost hint (one exp per (point, inducing) pair).
    cost = pl.CostEstimate(
        flops=4 * N * M * D + 20 * N * D,
        transcendentals=N * M + 3 * N,
        bytes_accessed=4 * (N * D + 2 * M * D + len(out_shapes) * N * D),
    )

    outs = pl.pallas_call(
        kernel,
        out_shape=tuple(out_shapes),
        grid_spec=pltpu.PrefetchScalarGridSpec(
            num_scalar_prefetch=0,
            grid=grid,
            in_specs=[
                pl.BlockSpec((D, tn), lambda i: (0, i)),   # x^T tile (lane-dense)
                pl.BlockSpec((M, D), lambda i: (0, 0)),    # scaled inducing points (resident)
                pl.BlockSpec((D, M), lambda i: (0, 0)),    # scaled V^T (resident)
            ],
            out_specs=tuple(out_specs),
        ),
        compiler_params=pltpu.CompilerParams(
            dimension_semantics=("parallel",),
            vmem_limit_bytes=32 * 1024 * 1024),
        cost_estimate=cost,
    )(xt, z_scaled, vt_scaled)

    if lane_dense_output:
        if return_hidden:
            return {"coefficients": outs[1], "tangent": outs[2], "manifold": outs[0]}
        return outs[0]

    y = outs[0].T
    if return_hidden:
        return {"coefficients": outs[1].T, "tangent": outs[2].T, "manifold": y}
    return y


def _reference(x, z, v, lengthscale):
    """Pure-JAX f32 reference of the same forward pass (for sanity checks)."""
    xz = jnp.dot(x, z.T, preferred_element_type=jnp.float32)
    sq = jnp.maximum(jnp.sum(x * x, -1, keepdims=True)
                     + jnp.sum(z * z, -1)[None, :] - 2.0 * xz, 0.0)
    k = jnp.exp(-sq / (2.0 * lengthscale ** 2))
    coeff = jnp.dot(k, v, preferred_element_type=jnp.float32)
    u = coeff - jnp.sum(coeff * x, -1, keepdims=True) * x
    nrm = jnp.sqrt(jnp.sum(u * u, -1, keepdims=True))
    good = nrm > 1e-12
    sinc = jnp.where(good, jnp.sin(nrm) / jnp.where(good, nrm, 1.0), 1.0)
    y = jnp.cos(nrm) * x + sinc * u
    return {"coefficients": coeff, "tangent": u, "manifold": y}


if __name__ == "__main__":
    key = jax.random.PRNGKey(0)
    kx, kz, kv, kx2 = jax.random.split(key, 4)

    N, D, M = 512, 8, 64          # 512 points on S^7, 64 inducing points
    LENGTHSCALE = 1.0

    x = jax.random.normal(kx, (N, D), dtype=jnp.float32)
    x = x / jnp.linalg.norm(x, axis=-1, keepdims=True)           # points on sphere
    Z = jax.random.normal(kz, (M, D), dtype=jnp.float32)
    Z = Z / jnp.linalg.norm(Z, axis=-1, keepdims=True)           # inducing points
    V = 0.1 * jax.random.normal(kv, (M, D), dtype=jnp.float32)   # variational weights

    ref = _reference(x, Z, V, LENGTHSCALE)

    # --- hidden-output path (coeff / tangent / manifold), default fast dtypes
    out = manifold_to_manifold_layer(x, Z, V, lengthscale=LENGTHSCALE,
                                     return_hidden=True)
    jax.block_until_ready(out)
    for name in ("coefficients", "tangent", "manifold"):
        assert jnp.allclose(out[name], ref[name], atol=3e-2, rtol=3e-2), \
            f"mismatch vs f32 reference (fast dtypes): {name}"
    # output must still lie on the sphere (exp-map stays f32)
    assert jnp.allclose(jnp.linalg.norm(out["manifold"], axis=-1), 1.0, atol=1e-4)

    # --- full-f32 path: tight tolerance against the reference ---------------
    out32 = manifold_to_manifold_layer(x, Z, V, lengthscale=LENGTHSCALE,
                                       return_hidden=True,
                                       matmul_dtype=jnp.float32,
                                       exp_dtype=jnp.float32)
    jax.block_until_ready(out32)
    for name in ("coefficients", "tangent", "manifold"):
        assert jnp.allclose(out32[name], ref[name], atol=2e-3, rtol=2e-3), \
            f"mismatch vs f32 reference (f32 path): {name}"

    # --- fast path: single output matches the hidden-path manifold ----------
    y_fast = manifold_to_manifold_layer(x, Z, V, lengthscale=LENGTHSCALE,
                                        return_hidden=False)
    jax.block_until_ready(y_fast)
    assert jnp.allclose(y_fast, out["manifold"], atol=1e-5, rtol=1e-5)

    # --- non-divisible N (ragged last block, no pad copy) --------------------
    N2 = 200
    x2 = jax.random.normal(kx2, (N2, D), dtype=jnp.float32)
    x2 = x2 / jnp.linalg.norm(x2, axis=-1, keepdims=True)
    y2 = manifold_to_manifold_layer(x2, Z, V, lengthscale=LENGTHSCALE,
                                    tile_n=128, return_hidden=False)
    jax.block_until_ready(y2)
    y2_ref = _reference(x2, Z, V, LENGTHSCALE)["manifold"]
    assert jnp.allclose(y2, y2_ref, atol=3e-2, rtol=3e-2), "mismatch on ragged-tail case"

    # --- explicit large tile (single grid step) ------------------------------
    y_big = manifold_to_manifold_layer(x, Z, V, lengthscale=LENGTHSCALE,
                                       tile_n=512, return_hidden=False)
    jax.block_until_ready(y_big)
    assert jnp.allclose(y_big, ref["manifold"], atol=3e-2, rtol=3e-2)

    print("KERNEL_OK")
</pallas_src>

<mosaic_0001>
module attributes {stable_mosaic.version = 11 : i64} {
  func.func @_m2m_kernel(%arg0: i32, %arg1: memref<8x128xf32, #tpu.memory_space<vmem>>, %arg2: memref<64x8xf32, #tpu.memory_space<vmem>>, %arg3: memref<8x64xbf16, #tpu.memory_space<vmem>>, %arg4: memref<8x128xf32, #tpu.memory_space<vmem>>, %arg5: memref<8x128xf32, #tpu.memory_space<vmem>>, %arg6: memref<8x128xf32, #tpu.memory_space<vmem>>) attributes {dimension_semantics = [#tpu.dimension_semantics<parallel>], iteration_bounds = array<i64: 4>, scalar_prefetch = 0 : i64, scratch_operands = 0 : i64, tpu.core_type = #tpu.core_type<tc>, window_params = [{transform_indices = @transform_0, window_bounds = array<i64: 8, 128>}, {pipeline_mode = #tpu.pipeline_mode<synchronous>, transform_indices = @transform_1, window_bounds = array<i64: 64, 8>}, {pipeline_mode = #tpu.pipeline_mode<synchronous>, transform_indices = @transform_2, window_bounds = array<i64: 8, 64>}, {transform_indices = @transform_3, window_bounds = array<i64: 8, 128>}, {transform_indices = @transform_4, window_bounds = array<i64: 8, 128>}, {transform_indices = @transform_5, window_bounds = array<i64: 8, 128>}]} {
    %c0 = arith.constant 0 : index
    %c0_0 = arith.constant 0 : index
    %0 = vector.load %arg1[%c0, %c0_0] : memref<8x128xf32, #tpu.memory_space<vmem>>, vector<8x128xf32>
    %c0_1 = arith.constant 0 : index
    %c0_2 = arith.constant 0 : index
    %1 = vector.load %arg2[%c0_1, %c0_2] : memref<64x8xf32, #tpu.memory_space<vmem>>, vector<64x8xf32>
    %c0_3 = arith.constant 0 : index
    %c0_4 = arith.constant 0 : index
    %2 = vector.load %arg3[%c0_3, %c0_4] : memref<8x64xbf16, #tpu.memory_space<vmem>>, vector<8x64xbf16>
    %cst = arith.constant dense<0.000000e+00> : vector<64x128xf32>
    %3 = tpu.matmul %1, %0, %cst {dimension_numbers = #tpu.dot_dimension_numbers<[1], [0], [0], [1], [0, 0, 1, 1], [], []>} : vector<64x8xf32>, vector<8x128xf32>, vector<64x128xf32> -> vector<64x128xf32>
    %4 = math.exp %3 : vector<64x128xf32>
    %5 = arith.truncf %4 : vector<64x128xf32> to vector<64x128xbf16>
    %cst_5 = arith.constant dense<0.000000e+00> : vector<8x128xf32>
    %6 = tpu.matmul %2, %5, %cst_5 {dimension_numbers = #tpu.dot_dimension_numbers<[1], [0], [0], [1], [0, 0, 1, 1], [], []>} : vector<8x64xbf16>, vector<64x128xbf16>, vector<8x128xf32> -> vector<8x128xf32>
    %7 = arith.mulf %6, %0 : vector<8x128xf32>
    %cst_6 = arith.constant dense<0.000000e+00> : vector<128xf32>
    %8 = vector.multi_reduction <add>, %7, %cst_6 [0] : vector<8x128xf32> to vector<128xf32>
    %9 = vector.shape_cast %8 : vector<128xf32> to vector<1x128xf32>
    %10 = vector.broadcast %9 : vector<1x128xf32> to vector<8x128xf32>
    %11 = arith.mulf %10, %0 : vector<8x128xf32>
    %12 = arith.subf %6, %11 : vector<8x128xf32>
    %13 = arith.mulf %12, %12 : vector<8x128xf32>
    %cst_7 = arith.constant dense<0.000000e+00> : vector<128xf32>
    %14 = vector.multi_reduction <add>, %13, %cst_7 [0] : vector<8x128xf32> to vector<128xf32>
    %15 = vector.shape_cast %14 : vector<128xf32> to vector<1x128xf32>
    %cst_8 = arith.constant 1.000000e-24 : f32
    %16 = vector.broadcast %cst_8 : f32 to vector<1x128xf32>
    %17 = arith.cmpf ogt, %15, %16 : vector<1x128xf32>
    %cst_9 = arith.constant 1.000000e+00 : f32
    %18 = vector.broadcast %cst_9 : f32 to vector<1x128xf32>
    %19 = arith.select %17, %15, %18 : vector<1x128xi1>, vector<1x128xf32>
    %20 = math.rsqrt %19 : vector<1x128xf32>
    %21 = arith.mulf %15, %20 : vector<1x128xf32>
    %22 = math.sin %21 : vector<1x128xf32>
    %23 = arith.mulf %22, %20 : vector<1x128xf32>
    %cst_10 = arith.constant 1.000000e+00 : f32
    %24 = vector.broadcast %cst_10 : f32 to vector<1x128xf32>
    %25 = arith.select %17, %23, %24 : vector<1x128xi1>, vector<1x128xf32>
    %26 = math.cos %21 : vector<1x128xf32>
    %27 = vector.broadcast %26 : vector<1x128xf32> to vector<8x128xf32>
    %28 = arith.mulf %27, %0 : vector<8x128xf32>
    %29 = vector.broadcast %25 : vector<1x128xf32> to vector<8x128xf32>
    %30 = arith.mulf %29, %12 : vector<8x128xf32>
    %31 = arith.addf %28, %30 : vector<8x128xf32>
    %c0_11 = arith.constant 0 : index
    %c0_12 = arith.constant 0 : index
    %32 = vector.load %arg4[%c0_11, %c0_12] : memref<8x128xf32, #tpu.memory_space<vmem>>, vector<8x128xf32>
    tpu.vector_store %arg4[%c0_11, %c0_12], %31 {strides = array<i32>} : memref<8x128xf32, #tpu.memory_space<vmem>>, vector<8x128xf32>,
    %c0_13 = arith.constant 0 : index
    %c0_14 = arith.constant 0 : index
    %33 = vector.load %arg5[%c0_13, %c0_14] : memref<8x128xf32, #tpu.memory_space<vmem>>, vector<8x128xf32>
    tpu.vector_store %arg5[%c0_13, %c0_14], %6 {strides = array<i32>} : memref<8x128xf32, #tpu.memory_space<vmem>>, vector<8x128xf32>,
    %c0_15 = arith.constant 0 : index
    %c0_16 = arith.constant 0 : index
    %34 = vector.load %arg6[%c0_15, %c0_16] : memref<8x128xf32, #tpu.memory_space<vmem>>, vector<8x128xf32>
    tpu.vector_store %arg6[%c0_15, %c0_16], %12 {strides = array<i32>} : memref<8x128xf32, #tpu.memory_space<vmem>>, vector<8x128xf32>,
    return
  }
  func.func @transform_0(%arg0: i32) -> (i32, i32) {
    %c0_i32 = arith.constant 0 : i32
    %c0_i32_0 = arith.constant 0 : i32
    return %c0_i32, %arg0 : i32, i32
  }
  func.func @transform_1(%arg0: i32) -> (i32, i32) {
    %c0_i32 = arith.constant 0 : i32
    %c0_i32_0 = arith.constant 0 : i32
    %c0_i32_1 = arith.constant 0 : i32
    return %c0_i32, %c0_i32_0 : i32, i32
  }
  func.func @transform_2(%arg0: i32) -> (i32, i32) {
    %c0_i32 = arith.constant 0 : i32
    %c0_i32_0 = arith.constant 0 : i32
    %c0_i32_1 = arith.constant 0 : i32
    return %c0_i32, %c0_i32_0 : i32, i32
  }
  func.func @transform_3(%arg0: i32) -> (i32, i32) {
    %c0_i32 = arith.constant 0 : i32
    %c0_i32_0 = arith.constant 0 : i32
    return %c0_i32, %arg0 : i32, i32
  }
  func.func @transform_4(%arg0: i32) -> (i32, i32) {
    %c0_i32 = arith.constant 0 : i32
    %c0_i32_0 = arith.constant 0 : i32
    return %c0_i32, %arg0 : i32, i32
  }
  func.func @transform_5(%arg0: i32) -> (i32, i32) {
    %c0_i32 = arith.constant 0 : i32
    %c0_i32_0 = arith.constant 0 : i32
    return %c0_i32, %arg0 : i32, i32
  }
}

</mosaic_0001>

<bundles_post_ra>
// kernel: tpu_custom_call.1
= control target key start
LH: loop header
LB: loop body
LE: loop exit
PB: predicated region body
PF: predicated region fallthrough
CT: control target
= control target key end

     0   :  { %11 = vsyncpa [#allocation3], 0  ;;  %s1403_s0 = inlined_call_operand.vmem [shape: f32[8,512], index: 0, kind: input, shape index: {}]   ;;  %s1404_s1 = inlined_call_operand.vmem [shape: f32[64,8], index: 1, kind: input, shape index: {}]   ;;  %s1405_s2 = inlined_call_operand.vmem [shape: bf16[8,64], index: 2, kind: input, shape index: {}]   ;;  %s1406_s3 = inlined_call_operand.hbm [shape: f32[8,512], index: 3, kind: output, shape index: {0}]   ;;  %s1407_s4 = inlined_call_operand.hbm [shape: f32[8,512], index: 4, kind: output, shape index: {1}]   ;;  %s1408_s5 = inlined_call_operand.hbm [shape: f32[8,512], index: 5, kind: output, shape index: {2}]  }
   0x1   :  { %13 = vsyncpa [#allocation3 + $0x1], 0 }
   0x2   :  { %14 = vsyncpa [#allocation5], 0 }
   0x3   :  { %16 = vsyncpa [#allocation5 + $0x1], 0  ;;  %s1163_s18 = smov 0   ;;  %s1165_s19 = smov 0  }
   0x4   :  { %s1167_s20 = smov 0   ;;  %s1169_s21 = smov 0  }
   0x5 LB: > { %s1184_s22 = sadd.s32 4294967295, %s1120_s21   ;;  %s848_s23 = sadd.s32 4294967294, %s1120_s21   ;;  %s1120_s21 = sphi %s1169_s21, %s1414_s21   ;;  %s1116_s20 = sphi %s1167_s20, %s1413_s20   ;;  %s1112_s19 = sphi %s1165_s19, %s1412_s19   ;;  %s1108_s18 = sphi %s1163_s18, %s1411_s18  }
   0x6   : > { %s1188_s24 = sadd.s32 1, %s1120_s21   ;;  %s97_s25 = sadd.s32 1, %s1116_s20 }
   0x7   : > { %s94_s26 = ssub.s32 %s1120_s21, %s1188_s24  ;;  %p107_p0 = scmp.ne.s32.totalorder %s1116_s20, %s1112_s19 }
   0x8   : > { %p95_p1 = scmp.eq.s32.totalorder %s94_s26, 0  ;;  %p108_p2 = scmp.eq.s32.totalorder %s1184_s22, 3 }
   0x9   : > { %p113_p3 = scmp.ne.s32.totalorder %s1112_s19, %s1108_s18  ;;  %p114_p4 = scmp.eq.s32.totalorder %s848_s23, 3 }
   0xa   : > { %s1201_s27 = scalar_select %p95_p1, %s1116_s20, %s97_s25  }
   0xb   : > { %p1203_p5 = por %p108_p2, %p107_p0  ;;  %p1207_p6 = por %p114_p4, %p113_p3 }
   0xc   : > { %p851_p7 = scmp.ge.s32.totalorder %s1120_s21, 1  ;;  %p197_p8 = scmp.lt.s32.totalorder %s1120_s21, 5 }
   0xe   : > { %p198_p9 = pnand %p851_p7, %p197_p8 }
   0xf   : > { %p234_p10 = scmp.lt.s32.totalorder (!%p198_p9), %s1184_s22, 3  ;;  %s217_s13 = sand.u32 (!%p198_p9), 1, %s1112_s19  }
  0x10   : > { %201 = sbr.rel (%p198_p9) target bundleno = 634 (0x27a), region = 32  ;;  %s1260_s14 = sshll.u32 (!%p198_p9), %s217_s13, 3 }
  0x11   : > { %s683_s15 = sand.u32 (!%p198_p9), 1, %s1184_s22   ;;  %s1264_s16 = sshll.u32 (!%p198_p9), %s1184_s22, 7 }
  0x12   : > { %s226_s17 = scalar_lea.vmem (!%p198_p9), [#allocation4], %s1260_s14  ;;  %s1271_s6 = scalar_lea.hbm (!%p198_p9), %s1407_s4, %s1264_s16 }
  0x13   : > { %s715_s25 = sshll.u32 (!%p198_p9), %s226_s17, 4  ;;  %s1273_s25 = int_to_ptr.vmem [resolvable:$true] %s715_s25 }
  0x15   : > { %v240_v0 = vld [vmem:[%s1404_s1] sm:$0xff]  ;;  %vm249_vm0 = vcmask 64512   ;;  %s235_s7 = scalar_select %p234_p10, %s1184_s22, 3  ;;  %v241_v2 = vld [vmem:[%s1404_s1 + $0x8] sm:$0xff]  ;;  %v242_v3 = vld [vmem:[%s1404_s1 + $0x10] sm:$0xff]  ;;  %v1122_v9 = vmov 0.0  }
  0x16   : > { %897 = vmatprep.mubr.msk.f32.mxu0 %vm249_vm0, %v240_v0  ;;  %v243_v4 = vld [vmem:[%s1404_s1 + $0x18] sm:$0xff]  ;;  %v244_v5 = vld [vmem:[%s1404_s1 + $0x20] sm:$0xff]  ;;  %v245_v6 = vld [vmem:[%s1404_s1 + $0x28] sm:$0xff]  ;;  %909 = vmatprep.subr.bf16.mxu1 %v1122_v9  ;;  %vm1123_vm1 = vmmov 0   ;;  %vm399_vm2 = vcmask 523264   ;;  %s1276_s22 = scalar_lea.sflag [#allocation5], %s683_s15 }
  0x17   : > { %s855_s8 = sshll.u32 %s235_s7, 3  ;;  %v246_v7 = vld [vmem:[%s1404_s1 + $0x30] sm:$0xff]  ;;  %v247_v8 = vld [vmem:[%s1404_s1 + $0x38] sm:$0xff]  ;;  %917 = vmatprep.mubr.msk.bf16.mxu1 %vm1123_vm1, %v1122_v9  ;;  %v248_v38 = vld [vmem:[%s1405_s2] sm:$0xf]  ;;  %s1004_s7 = scalar_lea.vmem %s1273_s25, 128 }
  0x18   : > { %s237_s11 = scalar_lea.vmem %s1403_s0, %s855_s8  ;;  %p1005_p11 = scmp.ne.s32.totalorder %s1273_s25, %s1004_s7 }
  0x19   : > { %v1222_v1 = vld [vmem:[%s237_s11] sm:$0xff]  ;;  %s1124_s8 = smov [#allocation4]  }
  0x1a   : > { %895 = vmatprep.subr.mxu0 %v1222_v1  ;;  %p1006_p12 = pnand %p1005_p11, %p1203_p5  ;;  %s1008_s9 = sshll.u32 %s1124_s8, 4  ;;  %s1009_s9 = int_to_ptr.vmem [resolvable:$false] %s1008_s9 }
  0x1b   : > { %896 = vmatpush3.msra.mxu0 %v1222_v1  ;;  %s1010_s10 = scalar_lea.vmem %s1009_s9, 256  ;;  %p1011_p0 = scmp.lt.s32.totalorder %s1273_s25, %s1009_s9 }
  0x1c   : > { %898 = vmatmul.mubr.msk.f32.vlgmr.msra.gmra.mxu0 %vm249_vm0, %v241_v2  ;;  %p1007_p13 = pneg %p1006_p12  ;;  %p1012_p1 = scmp.lt.s32.totalorder %s1010_s10, %s1004_s7 }
  0x1d   : > { %900 = vmatprep.mubr.msk.f32.mxu0 %vm249_vm0, %v242_v3 }
  0x1e   : > { %p1013_p2 = por %p1012_p1, %p1011_p0 }
  0x20   : > { %901 = vmatmul.mubr.msk.f32.gmra.mxu0 %vm249_vm0, %v243_v4  ;;  %p1014_p3 = pnand %p1013_p2, %p1007_p13 }
  0x21   : > { %903 = vmatprep.mubr.msk.f32.mxu0 %vm249_vm0, %v244_v5 }
  0x24   : > { %904 = vmatmul.mubr.msk.f32.gmra.mxu0 %vm249_vm0, %v245_v6 }
  0x25   : > { %906 = vmatprep.mubr.msk.f32.mxu0 %vm249_vm0, %v246_v7 }
  0x28   : > { %907 = vmatmul.mubr.msk.f32.gmra.mxu0 %vm249_vm0, %v247_v8 }
  0xdc   : > { %v899_v10 = vpop.f32.mrf.mxu0 }
  0xdd   : > { %v381_v25 = vmul.f32 1.442695, %v899_v10 }
  0xde   : > { %v340_v11 = vpop.f32.mrf.mxu0 }
  0xdf   : > { %v379_v24 = vmul.f32 1.442695, %v340_v11 }
  0xe0   : > { %v902_v12 = vpop.f32.mrf.mxu0 }
  0xe1   : > { %v385_v23 = vmul.f32 1.442695, %v902_v12 }
  0xe2   : > { %v350_v13 = vpop.f32.mrf.mxu0 }
  0xe3   : > { %v383_v22 = vmul.f32 1.442695, %v350_v13 }
  0xe4   : > { %v905_v14 = vpop.f32.mrf.mxu0 }
  0xe5   : > { %v389_v21 = vmul.f32 1.442695, %v905_v14 }
  0xe6   : > { %v360_v15 = vpop.f32.mrf.mxu0 }
  0xe7   : > { %v387_v19 = vmul.f32 1.442695, %v360_v15 }
  0xe8   : > { %v908_v16 = vpop.f32.mrf.mxu0 }
  0xe9   : > { %v393_v17 = vmul.f32 1.442695, %v908_v16 }
  0xea   : > { %v370_v18 = vpop.f32.mrf.mxu0 }
  0xeb   : > { %v391_v20 = vmul.f32 1.442695, %v370_v18  ;;  %982 = vpow2.f32 %v393_v17 }
  0xed   : > { %984 = vpow2.f32 %v391_v20 }
  0xee   : > { %986 = vpow2.f32 %v387_v19 }
  0xef   : > { %988 = vpow2.f32 %v389_v21 }
  0xf0   : > { %990 = vpow2.f32 %v383_v22 }
  0xf1   : > { %992 = vpow2.f32 %v385_v23 }
  0xf2   : > { %994 = vpow2.f32 %v379_v24 }
  0xf3   : > { %996 = vpow2.f32 %v381_v25 }
  0xf8   : > { %v983_v26 = vpop.eup %982 }
  0xfa   : > { %v985_v27 = vpop.eup %984 }
  0xfb   : > { %v398_v28 = vpack.c.bf16 %v983_v26, %v985_v27  ;;  %v987_v29 = vpop.eup %986 }
  0xfc   : > { %v989_v30 = vpop.eup %988 }
  0xfd   : > { %910 = vmatpush3.bf16.msra.mxu1 %v398_v28  ;;  %v397_v31 = vpack.c.bf16 %v989_v30, %v987_v29  ;;  %v991_v32 = vpop.eup %990 }
  0xfe   : > { %911 = vmatprep.subr.bf16.mxu1 %v1122_v9  ;;  %v993_v33 = vpop.eup %992 }
  0xff   : > { %v396_v34 = vpack.c.bf16 %v993_v33, %v991_v32  ;;  %v995_v35 = vpop.eup %994 }
 0x100   : > { %v997_v36 = vpop.eup %996 }
 0x101   : > { %912 = vmatpush3.bf16.msra.mxu1 %v397_v31  ;;  %v395_v37 = vpack.c.bf16 %v997_v36, %v995_v35 }
 0x102   : > { %913 = vmatprep.subr.bf16.mxu1 %v1122_v9 }
 0x105   : > { %914 = vmatpush3.bf16.msra.mxu1 %v396_v34 }
 0x106   : > { %915 = vmatprep.subr.bf16.mxu1 %v1122_v9 }
 0x109   : > { %916 = vmatpush3.bf16.msra.mxu1 %v395_v37 }
 0x10c   : > { %918 = vmatmul.mubr.msk.bf16.vlgmr.msra.gmra.mxu1 %vm399_vm2, %v248_v38 }
 0x1cc   : > { %v437_v39 = vpop.f32.mrf.mxu1 }
 0x1cd   : > { %v443_v40 = vmul.f32 %v437_v39, %v1222_v1  ;;  %676 = vst [vmem:[%s226_s17] sm:$0xff] %v437_v39 }
 0x1ce   : > { %v919_v41 = vpop.f32.mrf.mxu1 }
 0x1cf   : > { %1017 = shalt.err (!%p1014_p3)
}
 0x1d0   : > { %s1018_s11 = scalar_lea.hbm %s1271_s6, 128  ;;  %s1022_s17 = scalar_lea.hbm %s1407_s4, 512 }
 0x1d1   : > { %p1019_p4 = scmp.ne.s32.totalorder %s1271_s6, %s1018_s11  ;;  %p1023_p9 = scmp.lt.s32.totalorder %s1271_s6, %s1407_s4 }
 0x1d2   : > { %p1024_p10 = scmp.lt.s32.totalorder %s1022_s17, %s1018_s11 }
 0x1d3   : > { %p1020_p7 = pnand %p1019_p4, %p1203_p5 }
 0x1d4   : > { %p1025_p11 = por %p1024_p10, %p1023_p9 }
 0x1d5   : > { %p1021_p8 = pneg %p1020_p7 }
 0x1d7   : > { %p1026_p12 = pnand %p1025_p11, %p1021_p8 }
 0x1d9   : > { %1029 = shalt.err (!%p1026_p12)
}
 0x1da   : > { %926 = dma.vmem_to_hbm [thread:$0]  (%p1203_p5), %s1273_s25, 128, %s1271_s6, %s1276_s22   ;;  %v444_v42 = vrot.slane %v443_v40, 4  ;;  %v440_v43 = vpop.f32.mrf.mxu1 }
 0x1db   : > { %s1306_s9 = scalar_lea.hbm %s1408_s5, %s1264_s16  ;;  %s233_s10 = scalar_lea.vmem [#allocation6], %s1260_s14 }
 0x1dc   : > { %v445_v44 = vadd.f32 %v444_v42, %v443_v40  ;;  %v920_v45 = vpop.f32.mrf.mxu1  ;;  %s728_s25 = sshll.u32 %s233_s10, 4  ;;  %s1125_s11 = smov [#allocation6]   ;;  %s729_s25 = int_to_ptr.vmem [resolvable:$true] %s728_s25 }
 0x1dd   : > { %s1030_s6 = scalar_lea.vmem %s729_s25, 128  ;;  %s1034_s12 = sshll.u32 %s1125_s11, 4  ;;  %s1035_s12 = int_to_ptr.vmem [resolvable:$false] %s1034_s12 }
 0x1de   : > { %v446_v46 = vrot.slane %v445_v44, 2  ;;  %p1031_p13 = scmp.ne.s32.totalorder %s729_s25, %s1030_s6  ;;  %s1036_s15 = scalar_lea.vmem %s1035_s12, 256 }
 0x1df   : > { %p1037_p2 = scmp.lt.s32.totalorder %s729_s25, %s1035_s12  ;;  %p1038_p3 = scmp.lt.s32.totalorder %s1036_s15, %s1030_s6 }
 0x1e0   : > { %v447_v47 = vadd.f32 %v446_v46, %v445_v44  ;;  %p1032_p0 = pnand %p1031_p13, %p1203_p5 }
 0x1e1   : > { %p1039_p4 = por %p1038_p3, %p1037_p2 }
 0x1e2   : > { %v448_v48 = vrot.slane %v447_v47, 1  ;;  %p1033_p1 = pneg %p1032_p0 }
 0x1e4   : > { %v449_v49 = vadd.f32 %v448_v48, %v447_v47  ;;  %p1040_p7 = pnand %p1039_p4, %p1033_p1 }
 0x1e6   : > { %v450_v50 = vmul.f32 %v449_v49, %v1222_v1 }
 0x1e8   : > { %v1300_v51 = vsub.f32 %v437_v39, %v450_v50 }
 0x1ea   : > { %v452_v52 = vmul.f32 %v1300_v51, %v1300_v51  ;;  %677 = vst [vmem:[%s233_s10] sm:$0xff] %v1300_v51 }
 0x1eb   : > { %1043 = shalt.err (!%p1040_p7)
}
 0x1ec   : > { %s1044_s17 = scalar_lea.hbm %s1306_s9, 128  ;;  %s1048_s7 = scalar_lea.hbm %s1408_s5, 512 }
 0x1ed   : > { %p1045_p8 = scmp.ne.s32.totalorder %s1306_s9, %s1044_s17  ;;  %p1049_p11 = scmp.lt.s32.totalorder %s1306_s9, %s1408_s5 }
 0x1ee   : > { %p1050_p12 = scmp.lt.s32.totalorder %s1048_s7, %s1044_s17 }
 0x1ef   : > { %p1046_p9 = pnand %p1045_p8, %p1203_p5 }
 0x1f0   : > { %p1051_p13 = por %p1050_p12, %p1049_p11 }
 0x1f1   : > { %p1047_p10 = pneg %p1046_p9 }
 0x1f3   : > { %p1052_p0 = pnand %p1051_p13, %p1047_p10 }
 0x1f5   : > { %1055 = shalt.err (!%p1052_p0)
}
 0x1f6   : > { %927 = dma.vmem_to_hbm [thread:$0]  (%p1203_p5), %s729_s25, 128, %s1306_s9, %s1276_s22   ;;  %v453_v53 = vrot.slane %v452_v52, 4  ;;  %v1126_v9 = vmov 683565275   ;;  %v1127_v11 = vmov 2475754826  }
 0x1f7   : > { %v1128_v14 = vmov 2131351028   ;;  %v1129_v17 = vmov 2102212464   ;;  %v1130_v20 = vmov 920167782   ;;  %s700_s11 = scalar_lea.hbm %s1406_s3, %s1264_s16 }
 0x1f8   : > { %v454_v54 = vadd.f32 %v453_v53, %v452_v52  ;;  %v1131_v23 = vmov 1326507024   ;;  %s219_s22 = scalar_lea.vmem [#allocation2], %s1260_s14  ;;  %s679_s12 = scalar_lea.sflag [#allocation3], %s217_s13 }
 0x1f9   : > { %s702_s9 = sshll.u32 %s219_s22, 4  ;;  %s1132_s14 = smov [#allocation2]   ;;  %s703_s9 = int_to_ptr.vmem [resolvable:$true] %s702_s9 }
 0x1fa   : > { %v455_v55 = vrot.slane %v454_v54, 2  ;;  %s1056_s15 = scalar_lea.vmem %s703_s9, 128  ;;  %s1060_s17 = sshll.u32 %s1132_s14, 4  ;;  %s1061_s17 = int_to_ptr.vmem [resolvable:$false] %s1060_s17 }
 0x1fb   : > { %p1057_p1 = scmp.ne.s32.totalorder %s703_s9, %s1056_s15  ;;  %s1062_s26 = scalar_lea.vmem %s1061_s17, 256 }
 0x1fc   : > { %v456_v56 = vadd.f32 %v455_v55, %v454_v54  ;;  %p1063_p4 = scmp.lt.s32.totalorder %s703_s9, %s1061_s17  ;;  %p1064_p7 = scmp.lt.s32.totalorder %s1062_s26, %s1056_s15 }
 0x1fd   : > { %p1058_p2 = pnand %p1057_p1, %p1203_p5 }
 0x1fe   : > { %v457_v57 = vrot.slane %v456_v56, 1  ;;  %p1065_p8 = por %p1064_p7, %p1063_p4 }
 0x1ff   : > { %p1059_p3 = pneg %p1058_p2 }
 0x200   : > { %v1329_v58 = vadd.f32 %v457_v57, %v456_v56 }
 0x201   : > { %p1066_p9 = pnand %p1065_p8, %p1059_p3 }
 0x202   : > { %vm459_vm3 = vcmp.gt.f32.partialorder %v1329_v58, 1e-24 }
 0x203   : > { %v460_v59 = vsel %vm459_vm3, %v1329_v58, 1.0 }
 0x204   : > { %998 = vrsqrt.f32 %v460_v59 }
 0x211   : > { %v1335_v60 = vpop.eup %998 }
 0x212   : > { %v1339_v61 = vmul.f32 %v1335_v60, %v1329_v58 }
 0x214   : > { %v466_v62 = vand.u32 2139095040, %v1339_v61  ;;  %v463_v3 = vand.u32 2147483647, %v1339_v61  ;;  %vm465_vm11 = vcmp.lt.s32.totalorder %v1339_v61, 0 }
 0x216   : > { %v467_v63 = vshrl.u32 %v466_v62, 23  ;;  %v470_v6 = vand.u32 8388607, %v463_v3  ;;  %vm464_vm12 = vcmp.le.f32.partialorder %v463_v3, 0.7853982 }
 0x218   : > { %v865_v0 = vadd.s32 4294967169, %v467_v63  ;;  %v471_v25 = vor.u32 8388608, %v470_v6 }
 0x21a   : > { %v473_v2 = vadd.s32 1, %v865_v0  ;;  %v511_v39 = vshll.u32 %v471_v25, 8 }
 0x21c   : > { %vm474_vm4 = vcmp.gt.s32.totalorder %v473_v2, 0 }
 0x21d   : > { %v475_v4 = vsel %vm474_vm4, %v473_v2, 0  ;;  %vm555_vm4 = vweird.f32 %v1339_v61 }
 0x21e   : > { %v477_v5 = vand.u32 31, %v475_v4  ;;  %v476_v8 = vshrl.u32 %v475_v4, 5 }
 0x220   : > { %v478_v7 = vsub.s32 32, %v477_v5  ;;  %v480_v10 = vshll.u32 %v1126_v9, %v477_v5  ;;  %v483_v12 = vshll.u32 %v1127_v11, %v477_v5  ;;  %v486_v16 = vshll.u32 %v1128_v14, %v477_v5 }
 0x221   : > { %v489_v19 = vshll.u32 %v1129_v17, %v477_v5  ;;  %v492_v22 = vshll.u32 %v1130_v20, %v477_v5  ;;  %vm495_vm5 = vcmp.lt.s32.totalorder %v476_v8, 1  ;;  %vm498_vm6 = vcmp.lt.s32.totalorder %v476_v8, 4 }
 0x222   : > { %v481_v13 = vshrl.u32 %v1127_v11, %v478_v7  ;;  %v484_v15 = vshrl.u32 %v1128_v14, %v478_v7  ;;  %v487_v18 = vshrl.u32 %v1129_v17, %v478_v7  ;;  %v490_v21 = vshrl.u32 %v1130_v20, %v478_v7 }
 0x223   : > { %v493_v24 = vshrl.u32 %v1131_v23, %v478_v7  ;;  %v479_v34 = vshrl.u32 %v1126_v9, %v478_v7  ;;  %vm497_vm7 = vcmp.lt.s32.totalorder %v476_v8, 3  ;;  %vm496_vm8 = vcmp.lt.s32.totalorder %v476_v8, 2 }
 0x224   : > { %v482_v26 = vor.u32 %v481_v13, %v480_v10  ;;  %v485_v27 = vor.u32 %v484_v15, %v483_v12  ;;  %v488_v28 = vor.u32 %v487_v18, %v486_v16  ;;  %v491_v29 = vor.u32 %v490_v21, %v489_v19 }
 0x225   : > { %v494_v30 = vor.u32 %v493_v24, %v492_v22 }
 0x226   : > { %v500_v31 = vsel %vm498_vm6, %v488_v28, 2102212464  ;;  %v503_v32 = vsel %vm495_vm5, %v482_v26, %v485_v27  ;;  %v507_v33 = vsel %vm495_vm5, %v485_v27, %v488_v28  ;;  %v504_v35 = vsel %vm498_vm6, %v491_v29, 920167782 }
 0x227   : > { %v508_v36 = vsel %vm498_vm6, %v494_v30, 1326507024  ;;  %v505_v37 = vsel %vm497_vm7, %v488_v28, %v504_v35  ;;  %v499_v40 = vsel %vm495_vm5, %v479_v34, %v482_v26  ;;  %v501_v41 = vsel %vm497_vm7, %v485_v27, %v500_v31 }
 0x228   : > { %v509_v38 = vsel %vm497_vm7, %v491_v29, %v508_v36  ;;  %v506_v42 = vsel %vm496_vm8, %v503_v32, %v505_v37  ;;  %v502_v48 = vsel %vm496_vm8, %v499_v40, %v501_v41 }
 0x229   : > { %v510_v43 = vsel %vm496_vm8, %v507_v33, %v509_v38  ;;  %v1348_v46 = vmul.u32.u64.low %v511_v39, %v506_v42  ;;  %v1349_v47 = vmul.u32.u64.high %v511_v39, %v506_v42, %v1348_v46  ;;  %v518_v50 = vmul.u32 %v511_v39, %v502_v48 }
 0x22a   : > { %v1345_v44 = vmul.u32.u64.low %v511_v39, %v510_v43  ;;  %v1346_v45 = vmul.u32.u64.high %v511_v39, %v510_v43, %v1345_v44 }
 0x22b   : > { %v521_v49 = vadd.s32 1, %v1349_v47 }
 0x22c   : > { %vm520_vm9 = vc.u32 %v1346_v45, %v1348_v46  ;;  %v519_v4 = vadd.s32 %v1348_v46, %v1346_v45 }
 0x22d   : > { %v522_v52 = vsel %vm520_vm9, %v521_v49, %v1349_v47 }
 0x22e   : > { %v523_v53 = vadd.s32 %v522_v52, %v518_v50 }
 0x230   : > { %v524_v54 = vadd.s32 536870912, %v523_v53 }
 0x232   : > { %v525_v55 = vshrl.u32 %v524_v54, 30 }
 0x234   : > { %v526_v56 = vshll.u32 %v525_v55, 30  ;;  %v549_v17 = vsub.s32 4, %v525_v55 }
 0x236   : > { %v527_v57 = vsub.s32 %v523_v53, %v526_v56  ;;  %v550_v20 = vsel %vm465_vm11, %v549_v17, %v525_v55 }
 0x237   : > { %v552_v21 = vsel %vm464_vm12, 0, %v550_v20 }
 0x238   : > { %v529_v59 = vsub.s32 0, %v527_v57  ;;  %v556_v22 = vadd.s32 3, %v552_v21  ;;  %v662_v24 = vand.u32 3, %v552_v21 }
 0x23a   : > { %v866_v62 = vmin.u32 %v529_v59, %v527_v57  ;;  %v557_v23 = vand.u32 3, %v556_v22  ;;  %vm667_vm14 = vcmp.eq.s32.totalorder %v662_v24, 2  ;;  %vm664_vm0 = vcmp.eq.s32.totalorder %v662_v24, 0 }
 0x23b   : > { %vm663_vm2 = vcmp.lt.s32.totalorder %v662_v24, 2 }
 0x23c   : > { %v531_v63 = vclz %v866_v62  ;;  %vm562_vm13 = vcmp.eq.s32.totalorder %v557_v23, 2  ;;  %vm559_vm15 = vcmp.eq.s32.totalorder %v557_v23, 0  ;;  %vm558_vm1 = vcmp.lt.s32.totalorder %v557_v23, 2 }
 0x23e   : > { %v867_v0 = vadd.s32 4294967294, %v531_v63 }
 0x240   : > { %vm868_vm10 = vcmp.lt.s32.totalorder %v867_v0, 0 }
 0x241   : > { %v534_v2 = vsel %vm868_vm10, 0, %v867_v0 }
 0x242   : > { %v535_v5 = vsub.s32 32, %v534_v2  ;;  %v539_v6 = vsub.s32 4294967266, %v534_v2  ;;  %v536_v7 = vshll.u32 %v527_v57, %v534_v2 }
 0x244   : > { %v537_v8 = vshrl.u32 %v519_v4, %v535_v5  ;;  %v540_v9 = vadd.s32 127, %v539_v6 }
 0x246   : > { %v538_v10 = vor.u32 %v537_v8, %v536_v7  ;;  %v541_v11 = vshll.u32 %v540_v9, 23 }
 0x248   : > { %v542_v12 = vor.u32 4788187, %v541_v11  ;;  %v545_v14 = vcvt.s32.f32 %v538_v10 }
 0x24a   : > { %v543_v13 = vand.u32 2147483647, %v542_v12 }
 0x24c   : > { %v546_v15 = vmul.f32 %v545_v14, %v543_v13 }
 0x24e   : > { %v547_v16 = vxor.u32 2147483648, %v546_v15 }
 0x250   : > { %v548_v18 = vsel %vm465_vm11, %v547_v16, %v546_v15 }
 0x251   : > { %v551_v19 = vsel %vm464_vm12, %v1339_v61, %v548_v18 }
 0x252   : > { %1000 = vcosq.f32 %v551_v19 }
 0x253   : > { %1002 = vsinq.f32 %v551_v19 }
 0x25f   : > { %v1001_v25 = vpop.eup %1000 }
 0x260   : > { %v1003_v26 = vpop.eup %1002  ;;  %v563_v27 = vxor.u32 2147483648, %v1001_v25 }
 0x261   : > { %v560_v28 = vxor.u32 2147483648, %v1003_v26 }
 0x262   : > { %v564_v29 = vsel %vm562_vm13, %v563_v27, %v1003_v26  ;;  %v669_v3 = vsel %vm667_vm14, %v563_v27, %v1003_v26 }
 0x263   : > { %v561_v30 = vsel %vm559_vm15, %v1001_v25, %v560_v28  ;;  %v666_v31 = vsel %vm664_vm0, %v1001_v25, %v560_v28 }
 0x264   : > { %v565_v32 = vsel %vm558_vm1, %v561_v30, %v564_v29  ;;  %v670_v33 = vsel %vm663_vm2, %v666_v31, %v669_v3 }
 0x265   : > { %v566_v34 = vsel %vm555_vm4, nan, %v565_v32  ;;  %v671_v36 = vsel %vm555_vm4, nan, %v670_v33 }
 0x266   : > { %v567_v35 = vmul.f32 %v1335_v60, %v566_v34  ;;  %v672_v38 = vmul.f32 %v671_v36, %v1222_v1 }
 0x268   : > { %v568_v37 = vsel %vm459_vm3, %v567_v35, 1.0 }
 0x269   : > { %v673_v39 = vmul.f32 %v568_v37, %v1300_v51 }
 0x26b   : > { %v674_v40 = vadd.f32 %v673_v39, %v672_v38 }
 0x26d   : > { %675 = vst [vmem:[%s219_s22] sm:$0xff] %v674_v40 }
 0x26e   : > { %1069 = shalt.err (!%p1066_p9)
}
 0x26f   : > { %s1070_s30 = scalar_lea.hbm %s700_s11, 128  ;;  %s1074_s7 = scalar_lea.hbm %s1406_s3, 512 }
 0x270   : > { %p1071_p10 = scmp.ne.s32.totalorder %s700_s11, %s1070_s30  ;;  %p1075_p13 = scmp.lt.s32.totalorder %s700_s11, %s1406_s3 }
 0x271   : > { %p1076_p0 = scmp.lt.s32.totalorder %s1074_s7, %s1070_s30 }
 0x272   : > { %p1072_p11 = pnand %p1071_p10, %p1203_p5 }
 0x273   : > { %p1077_p1 = por %p1076_p0, %p1075_p13 }
 0x274   : > { %p1073_p12 = pneg %p1072_p11 }
 0x276   : > { %p1078_p2 = pnand %p1077_p1, %p1073_p12 }
 0x278   : > { %1081 = shalt.err (!%p1078_p2)
}
 0x279   : > { %925 = dma.vmem_to_hbm [thread:$0]  (%p1203_p5), %s703_s9, 128, %s700_s11, %s679_s12  }
 0x27a PF: > { %p941_p3 = scmp.ge.s32.totalorder %s1120_s21, 2  ;;  %s740_s22 = sand.u32 1, %s1108_s18  }
 0x27b   : > { %s741_s25 = scalar_lea.sflag [#allocation3], %s740_s22 }
 0x27c   : > { %p932_p4 = pnand %p941_p3, %p1207_p6 }
 0x27e   : > { %p933_p7 = pneg %p932_p4 }
 0x280   : > { %1099 = dma.done.wait (%p933_p7), %s741_s25, 128  }
 0x281   : > { %1101 = vsyncadd (%p933_p7), %s741_s25, 4294967168  ;;  %s749_s6 = sand.u32 1, %s848_s23  }
 0x282   : > { %s750_s15 = scalar_lea.sflag [#allocation5], %s749_s6 }
 0x283   : > { %1103 = dma.done.wait (%p933_p7), %s750_s15, 256  }
 0x284   : > { %1105 = vsyncadd (%p933_p7), %s750_s15, 4294967040  ;;  %p19_p5 = scmp.ge.s32.totalorder %s1188_s24, 6   ;;  %s1411_s18 = smov %s1112_s19 }
 0x285   : > { %s1412_s19 = smov %s1116_s20  ;;  %s1413_s20 = smov %s1201_s27 }
 0x286   : > { %s1414_s21 = smov %s1188_s24  ;;  %21 = sbr.rel (!%p19_p5) target bundleno = 5 (0x5), region = 99 }
 0x28b   :  { %764 = vsyncpa [#allocation3], 1 }
 0x28c   :  { %766 = vsyncpa [#allocation3 + $0x1], 1 }
 0x28d   :  { %767 = vsyncpa [#allocation5], 1 }
 0x28e   :  { %769 = vsyncpa [#allocation5 + $0x1], 1 }

</bundles_post_ra>
